<compile_context>
chip_gen: v7x
topology: tpu7x:2x2x1
jax: 0.10.0
libtpu: 0.0.40
codegen_flags: <defaults>
</compile_context>

<pallas_src>
import numpy as np

import jax
import jax.numpy as jnp
from jax.experimental import pallas as pl
from jax.experimental.pallas import tpu as pltpu


# -----------------------------------------------------------------------------
# Host-side interpolation matrices (baked in as constants)
# -----------------------------------------------------------------------------
def _interp_matrix_align_corners(out_size: int, in_size: int) -> np.ndarray:
    """Linear interpolation matrix A (out_size, in_size), align_corners=True."""
    if in_size == 1:
        return np.ones((out_size, 1), np.float32)
    denom = max(out_size - 1, 1)
    src = np.arange(out_size, dtype=np.float64) * (in_size - 1) / denom
    idx = np.arange(in_size, dtype=np.float64)
    # hat / tent function gives the exact 2-tap linear weights; rows sum to 1.
    return np.maximum(0.0, 1.0 - np.abs(src[:, None] - idx[None, :])).astype(np.float32)


def _combined_hw_matrix(H: int, W: int, Ho: int, Wo: int) -> np.ndarray:
    """Wmat[h*W + w, oh*Wo + ow] = A_h[oh, h] * A_w[ow, w]  -> shape (H*W, Ho*Wo)."""
    a_h = _interp_matrix_align_corners(Ho, H)            # (Ho, H)
    a_w = _interp_matrix_align_corners(Wo, W)            # (Wo, W)
    m = np.einsum("oh,pw->hwop", a_h, a_w)               # (H, W, Ho, Wo)
    return np.ascontiguousarray(m.reshape(H * W, Ho * Wo), dtype=np.float32)


# -----------------------------------------------------------------------------
# Pallas kernel: one lane-dense MXU matmul per batch-row tile (bf16 operands)
# -----------------------------------------------------------------------------
def _rows_mm_kernel(x_ref, w_ref, o_ref):
    # x_ref: (tb, K)  w_ref: (K, No) bf16  o_ref: (tb, No)
    o_ref[...] = jnp.dot(
        x_ref[...].astype(w_ref.dtype),      # bf16 x bf16 -> full-rate MXU
        w_ref[...],
        preferred_element_type=jnp.float32,  # f32 accumulation
    ).astype(o_ref.dtype)


def _pick_row_tile(B, K, No, in_itemsize, out_itemsize, w_bytes,
                   vmem_budget_bytes=24 * 1024 * 1024, tb_cap=1024):
    """Rows-per-tile: as big as VMEM allows, sublane-aligned, >=4 grid steps."""
    # Sublane packing: 8 rows for 32-bit, 16 for bf16, 32 for int8/fp8.
    sublane = max(8, 32 // min(in_itemsize, out_itemsize))
    # Double-buffered input + output tiles; weight block is double-buffered too.
    per_row = 2 * (K * in_itemsize + No * out_itemsize)
    budget = max(vmem_budget_bytes - 2 * w_bytes, per_row * sublane)
    tb = min(budget // per_row,              # fits VMEM (safe on v7x 64 MiB)
             tb_cap,                         # generation-safe hard cap
             max(pl.cdiv(B, 4), sublane))    # keep >=4 grid steps when possible
    tb = max(sublane, (int(tb) // sublane) * sublane)
    return tb


def _rows_matmul(x2d, w_mat, out_dtype):
    """(B, K) @ (K, No) -> (B, No) via a 1-D parallel grid over row tiles."""
    B, K = x2d.shape
    Kw, No = w_mat.shape
    assert Kw == K
    w_bytes = int(np.prod(w_mat.shape)) * jnp.dtype(w_mat.dtype).itemsize
    tb = _pick_row_tile(B, K, No,
                        jnp.dtype(x2d.dtype).itemsize,
                        jnp.dtype(out_dtype).itemsize,
                        w_bytes)
    grid = (pl.cdiv(B, tb),)                 # ragged final block: Pallas masks writes
    return pl.pallas_call(
        _rows_mm_kernel,
        out_shape=jax.ShapeDtypeStruct((B, No), out_dtype),
        grid=grid,
        in_specs=[
            pl.BlockSpec((tb, K), lambda i: (i, 0)),      # activation rows
            pl.BlockSpec((K, No), lambda i: (0, 0)),      # weights: VMEM-resident
        ],
        out_specs=pl.BlockSpec((tb, No), lambda i: (i, 0)),  # lane-dense output
        compiler_params=pltpu.CompilerParams(
            dimension_semantics=("parallel",),            # megacore-shardable (v7x)
            vmem_limit_bytes=32 * 1024 * 1024,
        ),
    )(x2d, w_mat)


# -----------------------------------------------------------------------------
# Upsampling wrapper
# -----------------------------------------------------------------------------
# Beyond this K = H*W, the dense Kronecker weight (and its 2x buffering) gets
# large and the MAC inflation crosses the MXU roofline -> use separable path.
_DENSE_KRON_MAX_K = 1024


def upsample_trilinear_1x2x2(x):
    """x: (N, C, D, H, W) -> (N, C, D, 2H, 2W), trilinear, align_corners=True."""
    N, C, D, H, W = x.shape
    Ho, Wo = 2 * H, 2 * W
    B = N * C * D

    if H * W <= _DENSE_KRON_MAX_K:
        # One fused Kronecker matmul:  (B, H*W) @ (H*W, Ho*Wo)
        w_mat = jnp.asarray(_combined_hw_matrix(H, W, Ho, Wo), jnp.bfloat16)
        out = _rows_matmul(x.reshape(B, H * W), w_mat, x.dtype)
        return out.reshape(N, C, D, Ho, Wo)

    # Separable fallback for large spatial slices: W-pass then H-pass
    # (two small lane-dense matmuls; transposes handled by XLA in the wrapper).
    a_w = jnp.asarray(_interp_matrix_align_corners(Wo, W).T, jnp.bfloat16)  # (W, Wo)
    a_h = jnp.asarray(_interp_matrix_align_corners(Ho, H).T, jnp.bfloat16)  # (H, Ho)
    y = _rows_matmul(x.reshape(B * H, W), a_w, x.dtype)                     # (B*H, Wo)
    y = y.reshape(B, H, Wo).transpose(0, 2, 1).reshape(B * Wo, H)
    z = _rows_matmul(y, a_h, x.dtype)                                       # (B*Wo, Ho)
    return z.reshape(B, Wo, Ho).transpose(0, 2, 1).reshape(N, C, D, Ho, Wo)


@jax.jit
def upsampling_forward(x):
    # TODO(synk): only scale_factor=(1, 2, 2) (the module's default) is supported;
    # a non-unit depth scale would need an extra D-interpolation stage.
    return upsample_trilinear_1x2x2(x)


# -----------------------------------------------------------------------------
# Independent pure-JAX reference (gather + lerp, f32), for verification
# -----------------------------------------------------------------------------
def _ref_upsample(x):
    N, C, D, H, W = x.shape
    Ho, Wo = 2 * H, 2 * W
    sh = jnp.arange(Ho, dtype=jnp.float32) * (H - 1) / (Ho - 1)
    sw = jnp.arange(Wo, dtype=jnp.float32) * (W - 1) / (Wo - 1)
    h0 = jnp.clip(jnp.floor(sh).astype(jnp.int32), 0, H - 1)
    h1 = jnp.minimum(h0 + 1, H - 1)
    fh = sh - h0.astype(jnp.float32)
    w0 = jnp.clip(jnp.floor(sw).astype(jnp.int32), 0, W - 1)
    w1 = jnp.minimum(w0 + 1, W - 1)
    fw = sw - w0.astype(jnp.float32)
    xh = x[..., h0, :] * (1.0 - fh)[:, None] + x[..., h1, :] * fh[:, None]  # (N,C,D,Ho,W)
    return xh[..., w0] * (1.0 - fw) + xh[..., w1] * fw                       # (N,C,D,Ho,Wo)


# -----------------------------------------------------------------------------
if __name__ == "__main__":
    key = jax.random.PRNGKey(0)

    # Module interface is NCDHW (PyTorch): batch=2, channels=4, D=8, H=W=16.
    N, C, D, H, W = 2, 4, 8, 16, 16
    x = jax.random.normal(key, (N, C, D, H, W), jnp.float32)

    out = upsampling_forward(x)
    out = jax.block_until_ready(out)

    ref = _ref_upsample(x)
    assert out.shape == (N, C, D, 2 * H, 2 * W)
    # bf16 operands (f32 accumulation) introduce ~0.4% relative error vs the
    # f32 PyTorch reference; tolerance chosen accordingly.
    assert jnp.allclose(out, ref, atol=5e-2, rtol=2e-2), "mismatch vs reference"
    assert bool(jnp.isfinite(out).all()), "non-finite output"

    print("KERNEL_OK")
</pallas_src>

<mosaic_0001>
module attributes {stable_mosaic.version = 11 : i64} {
  func.func @_rows_mm_kernel(%arg0: i32, %arg1: memref<16x256xf32, #tpu.memory_space<vmem>>, %arg2: memref<256x1024xbf16, #tpu.memory_space<vmem>>, %arg3: memref<16x1024xf32, #tpu.memory_space<vmem>>) attributes {dimension_semantics = [#tpu.dimension_semantics<parallel>], iteration_bounds = array<i64: 4>, scalar_prefetch = 0 : i64, scratch_operands = 0 : i64, tpu.core_type = #tpu.core_type<tc>, window_params = [{transform_indices = @transform_0, window_bounds = array<i64: 16, 256>}, {pipeline_mode = #tpu.pipeline_mode<synchronous>, transform_indices = @transform_1, window_bounds = array<i64: 256, 1024>}, {transform_indices = @transform_2, window_bounds = array<i64: 16, 1024>}]} {
    %c0 = arith.constant 0 : index
    %c0_0 = arith.constant 0 : index
    %0 = vector.load %arg1[%c0, %c0_0] : memref<16x256xf32, #tpu.memory_space<vmem>>, vector<16x256xf32>
    %1 = arith.truncf %0 : vector<16x256xf32> to vector<16x256xbf16>
    %c0_1 = arith.constant 0 : index
    %c0_2 = arith.constant 0 : index
    %2 = vector.load %arg2[%c0_1, %c0_2] : memref<256x1024xbf16, #tpu.memory_space<vmem>>, vector<256x1024xbf16>
    %cst = arith.constant dense<0.000000e+00> : vector<16x1024xf32>
    %3 = tpu.matmul %1, %2, %cst {dimension_numbers = #tpu.dot_dimension_numbers<[1], [0], [0], [1], [0, 0, 1, 1], [], []>} : vector<16x256xbf16>, vector<256x1024xbf16>, vector<16x1024xf32> -> vector<16x1024xf32>
    %c0_3 = arith.constant 0 : index
    %c0_4 = arith.constant 0 : index
    %4 = vector.load %arg3[%c0_3, %c0_4] : memref<16x1024xf32, #tpu.memory_space<vmem>>, vector<16x1024xf32>
    tpu.vector_store %arg3[%c0_3, %c0_4], %3 {strides = array<i32>} : memref<16x1024xf32, #tpu.memory_space<vmem>>, vector<16x1024xf32>,
    return
  }
  func.func @transform_0(%arg0: i32) -> (i32, i32) {
    %c0_i32 = arith.constant 0 : i32
    %c0_i32_0 = arith.constant 0 : i32
    return %arg0, %c0_i32 : i32, i32
  }
  func.func @transform_1(%arg0: i32) -> (i32, i32) {
    %c0_i32 = arith.constant 0 : i32
    %c0_i32_0 = arith.constant 0 : i32
    %c0_i32_1 = arith.constant 0 : i32
    return %c0_i32, %c0_i32_0 : i32, i32
  }
  func.func @transform_2(%arg0: i32) -> (i32, i32) {
    %c0_i32 = arith.constant 0 : i32
    %c0_i32_0 = arith.constant 0 : i32
    return %arg0, %c0_i32 : i32, i32
  }
}

</mosaic_0001>

<bundles_post_ra>
// kernel: upsampling_forward.1
= control target key start
LH: loop header
LB: loop body
LE: loop exit
PB: predicated region body
PF: predicated region fallthrough
CT: control target
= control target key end

     0   :  { %s1346_s9 = smov 0   ;;  %s1787_s0 = inlined_call_operand.vmem [shape: f32[64,256], index: 0, kind: input, shape index: {}]   ;;  %s1788_s1 = inlined_call_operand.vmem [shape: bf16[256,1024], index: 1, kind: input, shape index: {}]   ;;  %s1789_s2 = inlined_call_operand.vmem [shape: f32[64,1024], index: 2, kind: output, shape index: {}]  }
   0x1 LB: > { %s1172_s10 = sadd.s32 4294967295, %s1329_s9   ;;  %p1176_p0 = scmp.ge.s32.totalorder %s1329_s9, 1  ;;  %s1329_s9 = sphi %s1346_s9, %s12_s9  }
   0x2   : > { %p114_p1 = scmp.lt.s32.totalorder %s1329_s9, 5 }
   0x4   : > { %p115_p2 = pnand %p1176_p0, %p114_p1 }
   0x5   : > { %v158_v0 = vld [vmem:[%s1788_s1] sm:$0xff] (!%p115_p2)  ;;  %v159_v2 = vld [vmem:[%s1788_s1 + $0x8] sm:$0xff] (!%p115_p2)  ;;  %s1177_s7 = sshll.u32 (!%p115_p2), %s1172_s10, 1 }
   0x6   : > { %118 = sbr.rel (%p115_p2) target bundleno = 353 (0x161), region = 28  ;;  %v162_v1 = vld [vmem:[%s1788_s1 + $0x20] sm:$0xff] (!%p115_p2)  ;;  %v163_v4 = vld [vmem:[%s1788_s1 + $0x28] sm:$0xff] (!%p115_p2)  ;;  %p139_p3 = scmp.lt.s32.totalorder (!%p115_p2), %s1177_s7, 7 }
   0x7   : > { %v1184_v3 = vcombine.high (!%p115_p2), %v158_v0, %v162_v1  ;;  %v1183_v5 = vcombine.low (!%p115_p2), %v158_v0, %v162_v1  ;;  %v166_v6 = vld [vmem:[%s1788_s1 + $0x40] sm:$0xff] (!%p115_p2)  ;;  %v1186_v8 = vcombine.high (!%p115_p2), %v159_v2, %v163_v4  ;;  %v1185_v9 = vcombine.low (!%p115_p2), %v159_v2, %v163_v4  ;;  %v167_v11 = vld [vmem:[%s1788_s1 + $0x48] sm:$0xff] (!%p115_p2) }
   0x8   : > { %v170_v7 = vld [vmem:[%s1788_s1 + $0x60] sm:$0xff] (!%p115_p2)  ;;  %v171_v12 = vld [vmem:[%s1788_s1 + $0x68] sm:$0xff] (!%p115_p2) }
   0x9   : > { %v1192_v10 = vcombine.high (!%p115_p2), %v166_v6, %v170_v7  ;;  %v174_v13 = vld [vmem:[%s1788_s1 + $0x80] sm:$0xff] (!%p115_p2)  ;;  %926 = vmatprep.subr.bf16.mxu0 (!%p115_p2), %v1184_v3  ;;  %v1194_v14 = vcombine.high (!%p115_p2), %v167_v11, %v171_v12  ;;  %v175_v16 = vld [vmem:[%s1788_s1 + $0x88] sm:$0xff] (!%p115_p2)  ;;  %969 = vmatprep.subr.bf16.mxu1 (!%p115_p2), %v1186_v8  ;;  %v1191_v18 = vcombine.low (!%p115_p2), %v166_v6, %v170_v7 }
   0xa   : > { %v178_v15 = vld [vmem:[%s1788_s1 + $0xa0] sm:$0xff] (!%p115_p2)  ;;  %v179_v17 = vld [vmem:[%s1788_s1 + $0xa8] sm:$0xff] (!%p115_p2)  ;;  %927 = vmatpush1.bf16.msra.mxu0 (!%p115_p2), %v1183_v5  ;;  %970 = vmatpush1.bf16.msra.mxu1 (!%p115_p2), %v1185_v9  ;;  %v1193_v19 = vcombine.low (!%p115_p2), %v167_v11, %v171_v12 }
   0xb   : > { %928 = vmatprep.subr.bf16.mxu0 (!%p115_p2), %v1192_v10  ;;  %v1200_v20 = vcombine.high (!%p115_p2), %v174_v13, %v178_v15  ;;  %971 = vmatprep.subr.bf16.mxu1 (!%p115_p2), %v1194_v14  ;;  %v1202_v21 = vcombine.high (!%p115_p2), %v175_v16, %v179_v17  ;;  %v182_v22 = vld [vmem:[%s1788_s1 + $0xc0] sm:$0xff] (!%p115_p2)  ;;  %v183_v24 = vld [vmem:[%s1788_s1 + $0xc8] sm:$0xff] (!%p115_p2)  ;;  %v1199_v26 = vcombine.low (!%p115_p2), %v174_v13, %v178_v15 }
   0xc   : > { %v186_v23 = vld [vmem:[%s1788_s1 + $0xe0] sm:$0xff] (!%p115_p2)  ;;  %v187_v25 = vld [vmem:[%s1788_s1 + $0xe8] sm:$0xff] (!%p115_p2)  ;;  %v1201_v27 = vcombine.low (!%p115_p2), %v175_v16, %v179_v17 }
   0xd   : > { %v1208_v28 = vcombine.high %v182_v22, %v186_v23  ;;  %v1210_v29 = vcombine.high %v183_v24, %v187_v25  ;;  %v190_v30 = vld [vmem:[%s1788_s1 + $0x100] sm:$0xff]  ;;  %v191_v32 = vld [vmem:[%s1788_s1 + $0x108] sm:$0xff]  ;;  %s1791_s7 = smov (!%p139_p3, %s1177_s7), 7  ;;  %v1207_v34 = vcombine.low %v182_v22, %v186_v23  ;;  %v1209_v35 = vcombine.low %v183_v24, %v187_v25 }
   0xe   : > { %929 = vmatpush1.bf16.msra.mxu0 %v1191_v18  ;;  %972 = vmatpush1.bf16.msra.mxu1 %v1193_v19  ;;  %v194_v31 = vld [vmem:[%s1788_s1 + $0x120] sm:$0xff]  ;;  %v195_v33 = vld [vmem:[%s1788_s1 + $0x128] sm:$0xff]  ;;  %s1313_s5 = sshll.u32 %s1791_s7, 4  ;;  %s1314_s14 = sshll.u32 %s1791_s7, 6 }
   0xf   : > { %930 = vmatprep.subr.bf16.mxu0 %v1200_v20  ;;  %973 = vmatprep.subr.bf16.mxu1 %v1202_v21  ;;  %v1216_v36 = vcombine.high %v190_v30, %v194_v31  ;;  %v1218_v37 = vcombine.high %v191_v32, %v195_v33  ;;  %v198_v38 = vld [vmem:[%s1788_s1 + $0x140] sm:$0xff]  ;;  %v199_v40 = vld [vmem:[%s1788_s1 + $0x148] sm:$0xff]  ;;  %v1215_v42 = vcombine.low %v190_v30, %v194_v31  ;;  %s1438_s15 = scalar_lea.vmem %s1787_s0, %s1313_s5  ;;  %s1766_s17 = scalar_lea.vmem %s1789_s2, %s1314_s14 }
  0x10   : > { %v202_v39 = vld [vmem:[%s1788_s1 + $0x160] sm:$0xff]  ;;  %v203_v41 = vld [vmem:[%s1788_s1 + $0x168] sm:$0xff]  ;;  %v1217_v43 = vcombine.low %v191_v32, %v195_v33  ;;  %v155_v54 = vld [vmem:[%s1438_s15 + $0x18] sm:$0xff] }
  0x11   : > { %v1224_v44 = vcombine.high %v198_v38, %v202_v39  ;;  %v1226_v45 = vcombine.high %v199_v40, %v203_v41  ;;  %v206_v46 = vld [vmem:[%s1788_s1 + $0x180] sm:$0xff]  ;;  %v207_v48 = vld [vmem:[%s1788_s1 + $0x188] sm:$0xff]  ;;  %v1223_v50 = vcombine.low %v198_v38, %v202_v39  ;;  %v1225_v51 = vcombine.low %v199_v40, %v203_v41 }
  0x12   : > { %931 = vmatpush1.bf16.msra.mxu0 %v1199_v26  ;;  %974 = vmatpush1.bf16.msra.mxu1 %v1201_v27  ;;  %v210_v47 = vld [vmem:[%s1788_s1 + $0x1a0] sm:$0xff]  ;;  %v211_v49 = vld [vmem:[%s1788_s1 + $0x1a8] sm:$0xff] }
  0x13   : > { %932 = vmatprep.subr.bf16.mxu0 %v1208_v28  ;;  %975 = vmatprep.subr.bf16.mxu1 %v1210_v29  ;;  %v1232_v52 = vcombine.high %v206_v46, %v210_v47  ;;  %v153_v53 = vld [vmem:[%s1438_s15 + $0x8] sm:$0xff]  ;;  %v1234_v55 = vcombine.high %v207_v48, %v211_v49  ;;  %v214_v56 = vld [vmem:[%s1788_s1 + $0x1c0] sm:$0xff]  ;;  %v1231_v61 = vcombine.low %v206_v46, %v210_v47 }
  0x14   : > { %v218_v57 = vld [vmem:[%s1788_s1 + $0x1e0] sm:$0xff]  ;;  %v1454_v58 = vpack.c.bf16 %v155_v54, %v153_v53  ;;  %v215_v59 = vld [vmem:[%s1788_s1 + $0x1c8] sm:$0xff]  ;;  %v1233_v62 = vcombine.low %v207_v48, %v211_v49 }
  0x15   : > { %v219_v60 = vld [vmem:[%s1788_s1 + $0x1e8] sm:$0xff]  ;;  %v1240_v63 = vcombine.high %v214_v56, %v218_v57  ;;  %v222_v1 = vld [vmem:[%s1788_s1 + $0x200] sm:$0xff]  ;;  %v1239_v5 = vcombine.low %v214_v56, %v218_v57 }
  0x16   : > { %933 = vmatpush1.bf16.msra.mxu0 %v1207_v34  ;;  %976 = vmatpush1.bf16.msra.mxu1 %v1209_v35  ;;  %v1242_v0 = vcombine.high %v215_v59, %v219_v60  ;;  %v226_v2 = vld [vmem:[%s1788_s1 + $0x220] sm:$0xff]  ;;  %v223_v3 = vld [vmem:[%s1788_s1 + $0x208] sm:$0xff]  ;;  %v1241_v6 = vcombine.low %v215_v59, %v219_v60 }
  0x17   : > { %934 = vmatprep.subr.bf16.mxu0 %v1216_v36  ;;  %977 = vmatprep.subr.bf16.mxu1 %v1218_v37  ;;  %v227_v4 = vld [vmem:[%s1788_s1 + $0x228] sm:$0xff]  ;;  %v1248_v7 = vcombine.high %v222_v1, %v226_v2  ;;  %v230_v9 = vld [vmem:[%s1788_s1 + $0x240] sm:$0xff]  ;;  %v1247_v13 = vcombine.low %v222_v1, %v226_v2  ;;  %v160_v2 = vld [vmem:[%s1788_s1 + $0x10] sm:$0xff] }
  0x18   : > { %958 = vmatprep.mubr.bf16.mxu0 %v1454_v58  ;;  %1001 = vmatprep.mubr.bf16.mxu1 %v1454_v58  ;;  %v1250_v8 = vcombine.high %v223_v3, %v227_v4  ;;  %v234_v10 = vld [vmem:[%s1788_s1 + $0x260] sm:$0xff]  ;;  %v231_v11 = vld [vmem:[%s1788_s1 + $0x248] sm:$0xff]  ;;  %v1249_v14 = vcombine.low %v223_v3, %v227_v4  ;;  %v164_v3 = vld [vmem:[%s1788_s1 + $0x30] sm:$0xff] }
  0x19   : > { %v235_v12 = vld [vmem:[%s1788_s1 + $0x268] sm:$0xff]  ;;  %v1256_v15 = vcombine.high %v230_v9, %v234_v10  ;;  %v238_v17 = vld [vmem:[%s1788_s1 + $0x280] sm:$0xff]  ;;  %v1255_v21 = vcombine.low %v230_v9, %v234_v10  ;;  %v161_v4 = vld [vmem:[%s1788_s1 + $0x18] sm:$0xff]  ;;  %v1188_v10 = vcombine.high %v160_v2, %v164_v3 }
  0x1a   : > { %935 = vmatpush1.bf16.msra.mxu0 %v1215_v42  ;;  %978 = vmatpush1.bf16.msra.mxu1 %v1217_v43  ;;  %v1258_v16 = vcombine.high %v231_v11, %v235_v12  ;;  %v242_v18 = vld [vmem:[%s1788_s1 + $0x2a0] sm:$0xff]  ;;  %v239_v19 = vld [vmem:[%s1788_s1 + $0x288] sm:$0xff]  ;;  %v1257_v22 = vcombine.low %v231_v11, %v235_v12  ;;  %v168_v12 = vld [vmem:[%s1788_s1 + $0x50] sm:$0xff] }
  0x1b   : > { %936 = vmatprep.subr.bf16.mxu0 %v1224_v44  ;;  %979 = vmatprep.subr.bf16.mxu1 %v1226_v45  ;;  %v243_v20 = vld [vmem:[%s1788_s1 + $0x2a8] sm:$0xff]  ;;  %v1264_v23 = vcombine.high %v238_v17, %v242_v18  ;;  %v246_v25 = vld [vmem:[%s1788_s1 + $0x2c0] sm:$0xff]  ;;  %v1263_v29 = vcombine.low %v238_v17, %v242_v18  ;;  %v1187_v17 = vcombine.low %v160_v2, %v164_v3 }
  0x1c   : > { %v1266_v24 = vcombine.high %v239_v19, %v243_v20  ;;  %v250_v26 = vld [vmem:[%s1788_s1 + $0x2e0] sm:$0xff]  ;;  %v247_v27 = vld [vmem:[%s1788_s1 + $0x2c8] sm:$0xff]  ;;  %v1265_v30 = vcombine.low %v239_v19, %v243_v20 }
  0x1d   : > { %v251_v28 = vld [vmem:[%s1788_s1 + $0x2e8] sm:$0xff]  ;;  %v1272_v31 = vcombine.high %v246_v25, %v250_v26  ;;  %v254_v33 = vld [vmem:[%s1788_s1 + $0x300] sm:$0xff]  ;;  %v1271_v37 = vcombine.low %v246_v25, %v250_v26 }
  0x1e   : > { %937 = vmatpush1.bf16.msra.mxu0 %v1223_v50  ;;  %980 = vmatpush1.bf16.msra.mxu1 %v1225_v51  ;;  %v1274_v32 = vcombine.high %v247_v27, %v251_v28  ;;  %v258_v34 = vld [vmem:[%s1788_s1 + $0x320] sm:$0xff]  ;;  %v255_v35 = vld [vmem:[%s1788_s1 + $0x308] sm:$0xff]  ;;  %v1273_v38 = vcombine.low %v247_v27, %v251_v28 }
  0x1f   : > { %938 = vmatprep.subr.bf16.mxu0 %v1232_v52  ;;  %981 = vmatprep.subr.bf16.mxu1 %v1234_v55  ;;  %v259_v36 = vld [vmem:[%s1788_s1 + $0x328] sm:$0xff]  ;;  %v1280_v39 = vcombine.high %v254_v33, %v258_v34  ;;  %v262_v41 = vld [vmem:[%s1788_s1 + $0x340] sm:$0xff]  ;;  %v1279_v45 = vcombine.low %v254_v33, %v258_v34 }
  0x20   : > { %v1282_v40 = vcombine.high %v255_v35, %v259_v36  ;;  %v266_v42 = vld [vmem:[%s1788_s1 + $0x360] sm:$0xff]  ;;  %v263_v43 = vld [vmem:[%s1788_s1 + $0x348] sm:$0xff]  ;;  %v1281_v46 = vcombine.low %v255_v35, %v259_v36 }
  0x21   : > { %v267_v44 = vld [vmem:[%s1788_s1 + $0x368] sm:$0xff]  ;;  %v1288_v47 = vcombine.high %v262_v41, %v266_v42  ;;  %v270_v49 = vld [vmem:[%s1788_s1 + $0x380] sm:$0xff]  ;;  %v1287_v53 = vcombine.low %v262_v41, %v266_v42 }
  0x22   : > { %939 = vmatpush1.bf16.msra.mxu0 %v1231_v61  ;;  %982 = vmatpush1.bf16.msra.mxu1 %v1233_v62  ;;  %v1290_v48 = vcombine.high %v263_v43, %v267_v44  ;;  %v274_v50 = vld [vmem:[%s1788_s1 + $0x3a0] sm:$0xff]  ;;  %v271_v51 = vld [vmem:[%s1788_s1 + $0x388] sm:$0xff]  ;;  %v1289_v54 = vcombine.low %v263_v43, %v267_v44  ;;  %v200_v44 = vld [vmem:[%s1788_s1 + $0x150] sm:$0xff] }
  0x23   : > { %940 = vmatprep.subr.bf16.mxu0 %v1240_v63  ;;  %983 = vmatprep.subr.bf16.mxu1 %v1242_v0  ;;  %v275_v52 = vld [vmem:[%s1788_s1 + $0x3a8] sm:$0xff]  ;;  %v1296_v55 = vcombine.high %v270_v49, %v274_v50  ;;  %v278_v57 = vld [vmem:[%s1788_s1 + $0x3c0] sm:$0xff]  ;;  %v1295_v62 = vcombine.low %v270_v49, %v274_v50 }
  0x24   : > { %v1298_v56 = vcombine.high %v271_v51, %v275_v52  ;;  %v282_v59 = vld [vmem:[%s1788_s1 + $0x3e0] sm:$0xff]  ;;  %v279_v60 = vld [vmem:[%s1788_s1 + $0x3c8] sm:$0xff]  ;;  %v1297_v63 = vcombine.low %v271_v51, %v275_v52  ;;  %v208_v52 = vld [vmem:[%s1788_s1 + $0x190] sm:$0xff] }
  0x25   : > { %v283_v61 = vld [vmem:[%s1788_s1 + $0x3e8] sm:$0xff]  ;;  %v1304_v0 = vcombine.high %v278_v57, %v282_v59 }
  0x26   : > { %941 = vmatpush1.bf16.msra.mxu0 %v1239_v5  ;;  %984 = vmatpush1.bf16.msra.mxu1 %v1241_v6  ;;  %v1306_v1 = vcombine.high %v279_v60, %v283_v61  ;;  %v165_v5 = vld [vmem:[%s1788_s1 + $0x38] sm:$0xff]  ;;  %v1303_v6 = vcombine.low %v278_v57, %v282_v59  ;;  %v1305_v9 = vcombine.low %v279_v60, %v283_v61  ;;  %v216_v61 = vld [vmem:[%s1788_s1 + $0x1d0] sm:$0xff] }
  0x27   : > { %942 = vmatprep.subr.bf16.mxu0 %v1248_v7  ;;  %985 = vmatprep.subr.bf16.mxu1 %v1250_v8  ;;  %v152_v7 = vld [vmem:[%s1438_s15] sm:$0xff]  ;;  %v154_v8 = vld [vmem:[%s1438_s15 + $0x10] sm:$0xff]  ;;  %v1190_v11 = vcombine.high %v161_v4, %v165_v5  ;;  %v1189_v18 = vcombine.low %v161_v4, %v165_v5 }
  0x28   : > { %v224_v5 = vld [vmem:[%s1788_s1 + $0x210] sm:$0xff] }
  0x2a   : > { %943 = vmatpush1.bf16.msra.mxu0 %v1247_v13  ;;  %986 = vmatpush1.bf16.msra.mxu1 %v1249_v14  ;;  %v172_v13 = vld [vmem:[%s1788_s1 + $0x70] sm:$0xff]  ;;  %v1580_v14 = vpack.c.bf16 %v154_v8, %v152_v7  ;;  %v225_v7 = vld [vmem:[%s1788_s1 + $0x218] sm:$0xff] }
  0x2b   : > { %944 = vmatprep.subr.bf16.mxu0 %v1256_v15  ;;  %987 = vmatprep.subr.bf16.mxu1 %v1258_v16  ;;  %v169_v15 = vld [vmem:[%s1788_s1 + $0x58] sm:$0xff]  ;;  %v1196_v19 = vcombine.high %v168_v12, %v172_v13  ;;  %v1195_v25 = vcombine.low %v168_v12, %v172_v13  ;;  %v232_v13 = vld [vmem:[%s1788_s1 + $0x250] sm:$0xff] }
  0x2c   : > { %v173_v16 = vld [vmem:[%s1788_s1 + $0x78] sm:$0xff] }
  0x2d   : > { %v1198_v20 = vcombine.high %v169_v15, %v173_v16  ;;  %v1197_v26 = vcombine.low %v169_v15, %v173_v16  ;;  %v229_v8 = vld [vmem:[%s1788_s1 + $0x238] sm:$0xff]  ;;  %v236_v15 = vld [vmem:[%s1788_s1 + $0x270] sm:$0xff] }
  0x2e   : > { %945 = vmatpush1.bf16.msra.mxu0 %v1255_v21  ;;  %988 = vmatpush1.bf16.msra.mxu1 %v1257_v22  ;;  %v176_v21 = vld [vmem:[%s1788_s1 + $0x90] sm:$0xff]  ;;  %v1254_v12 = vcombine.high %v225_v7, %v229_v8  ;;  %v233_v16 = vld [vmem:[%s1788_s1 + $0x258] sm:$0xff] }
  0x2f   : > { %946 = vmatprep.subr.bf16.mxu0 %v1264_v23  ;;  %989 = vmatprep.subr.bf16.mxu1 %v1266_v24  ;;  %v180_v22 = vld [vmem:[%s1788_s1 + $0xb0] sm:$0xff]  ;;  %v177_v23 = vld [vmem:[%s1788_s1 + $0x98] sm:$0xff] }
  0x30   : > { %v181_v24 = vld [vmem:[%s1788_s1 + $0xb8] sm:$0xff]  ;;  %v1204_v27 = vcombine.high %v176_v21, %v180_v22  ;;  %v1203_v33 = vcombine.low %v176_v21, %v180_v22  ;;  %v240_v22 = vld [vmem:[%s1788_s1 + $0x290] sm:$0xff] }
  0x31   : > { %v1206_v28 = vcombine.high %v177_v23, %v181_v24  ;;  %v1205_v34 = vcombine.low %v177_v23, %v181_v24  ;;  %v244_v23 = vld [vmem:[%s1788_s1 + $0x2b0] sm:$0xff]  ;;  %v241_v24 = vld [vmem:[%s1788_s1 + $0x298] sm:$0xff] }
  0x32   : > { %947 = vmatpush1.bf16.msra.mxu0 %v1263_v29  ;;  %990 = vmatpush1.bf16.msra.mxu1 %v1265_v30  ;;  %v184_v29 = vld [vmem:[%s1788_s1 + $0xd0] sm:$0xff] }
  0x33   : > { %948 = vmatprep.subr.bf16.mxu0 %v1272_v31  ;;  %991 = vmatprep.subr.bf16.mxu1 %v1274_v32  ;;  %v188_v30 = vld [vmem:[%s1788_s1 + $0xf0] sm:$0xff]  ;;  %v185_v31 = vld [vmem:[%s1788_s1 + $0xd8] sm:$0xff] }
  0x34   : > { %v189_v32 = vld [vmem:[%s1788_s1 + $0xf8] sm:$0xff]  ;;  %v1212_v35 = vcombine.high %v184_v29, %v188_v30 }
  0x35   : > { %v1214_v36 = vcombine.high %v185_v31, %v189_v32  ;;  %v1213_v41 = vcombine.low %v185_v31, %v189_v32  ;;  %v252_v31 = vld [vmem:[%s1788_s1 + $0x2f0] sm:$0xff]  ;;  %v249_v32 = vld [vmem:[%s1788_s1 + $0x2d8] sm:$0xff] }
  0x36   : > { %949 = vmatpush1.bf16.msra.mxu0 %v1271_v37  ;;  %992 = vmatpush1.bf16.msra.mxu1 %v1273_v38  ;;  %v192_v37 = vld [vmem:[%s1788_s1 + $0x110] sm:$0xff] }
  0x37   : > { %950 = vmatprep.subr.bf16.mxu0 %v1280_v39  ;;  %993 = vmatprep.subr.bf16.mxu1 %v1282_v40  ;;  %v196_v38 = vld [vmem:[%s1788_s1 + $0x130] sm:$0xff]  ;;  %v197_v39 = vld [vmem:[%s1788_s1 + $0x138] sm:$0xff]  ;;  %v1211_v40 = vcombine.low %v184_v29, %v188_v30 }
  0x38   : > { %v1220_v42 = vcombine.high %v192_v37, %v196_v38  ;;  %v248_v30 = vld [vmem:[%s1788_s1 + $0x2d0] sm:$0xff] }
  0x3a   : > { %951 = vmatpush1.bf16.msra.mxu0 %v1279_v45  ;;  %994 = vmatpush1.bf16.msra.mxu1 %v1281_v46  ;;  %v204_v45 = vld [vmem:[%s1788_s1 + $0x170] sm:$0xff]  ;;  %v201_v46 = vld [vmem:[%s1788_s1 + $0x158] sm:$0xff] }
  0x3b   : > { %952 = vmatprep.subr.bf16.mxu0 %v1288_v47  ;;  %995 = vmatprep.subr.bf16.mxu1 %v1290_v48  ;;  %v205_v47 = vld [vmem:[%s1788_s1 + $0x178] sm:$0xff]  ;;  %v1219_v48 = vcombine.low %v192_v37, %v196_v38  ;;  %v1228_v50 = vcombine.high %v200_v44, %v204_v45  ;;  %v256_v38 = vld [vmem:[%s1788_s1 + $0x310] sm:$0xff] }
  0x3c   : > { %v1230_v51 = vcombine.high %v201_v46, %v205_v47  ;;  %v1229_v57 = vcombine.low %v201_v46, %v205_v47  ;;  %v268_v46 = vld [vmem:[%s1788_s1 + $0x370] sm:$0xff]  ;;  %v265_v47 = vld [vmem:[%s1788_s1 + $0x358] sm:$0xff] }
  0x3e   : > { %953 = vmatpush1.bf16.msra.mxu0 %v1287_v53  ;;  %996 = vmatpush1.bf16.msra.mxu1 %v1289_v54  ;;  %v212_v53 = vld [vmem:[%s1788_s1 + $0x1b0] sm:$0xff]  ;;  %v209_v54 = vld [vmem:[%s1788_s1 + $0x198] sm:$0xff] }
  0x3f   : > { %954 = vmatprep.subr.bf16.mxu0 %v1296_v55  ;;  %997 = vmatprep.subr.bf16.mxu1 %v1298_v56  ;;  %v213_v55 = vld [vmem:[%s1788_s1 + $0x1b8] sm:$0xff]  ;;  %v1227_v56 = vcombine.low %v200_v44, %v204_v45  ;;  %v1236_v59 = vcombine.high %v208_v52, %v212_v53  ;;  %v264_v45 = vld [vmem:[%s1788_s1 + $0x350] sm:$0xff] }
  0x40   : > { %v1238_v60 = vcombine.high %v209_v54, %v213_v55  ;;  %v1237_v2 = vcombine.low %v209_v54, %v213_v55  ;;  %v276_v54 = vld [vmem:[%s1788_s1 + $0x3b0] sm:$0xff]  ;;  %v273_v55 = vld [vmem:[%s1788_s1 + $0x398] sm:$0xff] }
  0x42   : > { %955 = vmatpush1.bf16.msra.mxu0 %v1295_v62  ;;  %998 = vmatpush1.bf16.msra.mxu1 %v1297_v63  ;;  %v220_v62 = vld [vmem:[%s1788_s1 + $0x1f0] sm:$0xff]  ;;  %v217_v63 = vld [vmem:[%s1788_s1 + $0x1d8] sm:$0xff] }
  0x43   : > { %956 = vmatprep.subr.bf16.mxu0 %v1304_v0  ;;  %999 = vmatprep.subr.bf16.mxu1 %v1306_v1  ;;  %v221_v0 = vld [vmem:[%s1788_s1 + $0x1f8] sm:$0xff]  ;;  %v1235_v1 = vcombine.low %v208_v52, %v212_v53  ;;  %v1244_v3 = vcombine.high %v216_v61, %v220_v62  ;;  %v272_v53 = vld [vmem:[%s1788_s1 + $0x390] sm:$0xff] }
  0x44   : > { %v1246_v4 = vcombine.high %v217_v63, %v221_v0 }
  0x46   : > { %957 = vmatpush1.bf16.msra.mxu0 %v1303_v6  ;;  %1000 = vmatpush1.bf16.msra.mxu1 %v1305_v9  ;;  %v228_v6 = vld [vmem:[%s1788_s1 + $0x230] sm:$0xff]  ;;  %v1243_v9 = vcombine.low %v216_v61, %v220_v62 }
  0x47   : > { %1012 = vmatprep.subr.bf16.mxu0 %v1188_v10  ;;  %1055 = vmatprep.subr.bf16.mxu1 %v1190_v11  ;;  %v1245_v10 = vcombine.low %v217_v63, %v221_v0  ;;  %v1252_v11 = vcombine.high %v224_v5, %v228_v6  ;;  %v280_v62 = vld [vmem:[%s1788_s1 + $0x3d0] sm:$0xff]  ;;  %v281_v0 = vld [vmem:[%s1788_s1 + $0x3d8] sm:$0xff] }
  0x48   : > { %v284_v63 = vld [vmem:[%s1788_s1 + $0x3f0] sm:$0xff] }
  0x49   : > { %959 = vmatmul.mubr.bf16.vlgmr.msra.gmra.mrb[0].mxu0 %v1580_v14  ;;  %1002 = vmatmul.mubr.bf16.vlgmr.msra.gmra.mrb[0].mxu1 %v1580_v14 }
  0x4a   : > { %1013 = vmatpush1.bf16.msra.mxu0 %v1187_v17  ;;  %1056 = vmatpush1.bf16.msra.mxu1 %v1189_v18  ;;  %v237_v17 = vld [vmem:[%s1788_s1 + $0x278] sm:$0xff]  ;;  %v1251_v18 = vcombine.low %v224_v5, %v228_v6  ;;  %v1307_v6 = vcombine.low %v280_v62, %v284_v63 }
  0x4b   : > { %1014 = vmatprep.subr.bf16.mxu0 %v1196_v19  ;;  %1057 = vmatprep.subr.bf16.mxu1 %v1198_v20  ;;  %v1253_v19 = vcombine.low %v225_v7, %v229_v8  ;;  %v1260_v20 = vcombine.high %v232_v13, %v236_v15  ;;  %v1262_v21 = vcombine.high %v233_v16, %v237_v17 }
  0x4c   : > { %1044 = vmatprep.mubr.bf16.mxu0 %v1454_v58  ;;  %1087 = vmatprep.mubr.bf16.mxu1 %v1454_v58  ;;  %v193_v58 = vld [vmem:[%s1788_s1 + $0x118] sm:$0xff] }
  0x4d   : > { %v1222_v43 = vcombine.high %v193_v58, %v197_v39  ;;  %v1221_v49 = vcombine.low %v193_v58, %v197_v39  ;;  %v260_v58 = vld [vmem:[%s1788_s1 + $0x330] sm:$0xff]  ;;  %v257_v39 = vld [vmem:[%s1788_s1 + $0x318] sm:$0xff] }
  0x4e   : > { %1015 = vmatpush1.bf16.msra.mxu0 %v1195_v25  ;;  %1058 = vmatpush1.bf16.msra.mxu1 %v1197_v26  ;;  %v245_v25 = vld [vmem:[%s1788_s1 + $0x2b8] sm:$0xff]  ;;  %v1259_v26 = vcombine.low %v232_v13, %v236_v15 }
  0x4f   : > { %1016 = vmatprep.subr.bf16.mxu0 %v1204_v27  ;;  %1059 = vmatprep.subr.bf16.mxu1 %v1206_v28  ;;  %v1261_v27 = vcombine.low %v233_v16, %v237_v17  ;;  %v1268_v28 = vcombine.high %v240_v22, %v244_v23  ;;  %v1270_v29 = vcombine.high %v241_v24, %v245_v25 }
  0x52   : > { %1017 = vmatpush1.bf16.msra.mxu0 %v1203_v33  ;;  %1060 = vmatpush1.bf16.msra.mxu1 %v1205_v34  ;;  %v253_v33 = vld [vmem:[%s1788_s1 + $0x2f8] sm:$0xff]  ;;  %v1267_v34 = vcombine.low %v240_v22, %v244_v23 }
  0x53   : > { %1018 = vmatprep.subr.bf16.mxu0 %v1212_v35  ;;  %1061 = vmatprep.subr.bf16.mxu1 %v1214_v36  ;;  %v1269_v35 = vcombine.low %v241_v24, %v245_v25  ;;  %v1276_v36 = vcombine.high %v248_v30, %v252_v31  ;;  %v1278_v37 = vcombine.high %v249_v32, %v253_v33 }
  0x56   : > { %1019 = vmatpush1.bf16.msra.mxu0 %v1211_v40  ;;  %1062 = vmatpush1.bf16.msra.mxu1 %v1213_v41  ;;  %v261_v40 = vld [vmem:[%s1788_s1 + $0x338] sm:$0xff]  ;;  %v1275_v41 = vcombine.low %v248_v30, %v252_v31 }
  0x57   : > { %1020 = vmatprep.subr.bf16.mxu0 %v1220_v42  ;;  %1063 = vmatprep.subr.bf16.mxu1 %v1222_v43  ;;  %v1277_v42 = vcombine.low %v249_v32, %v253_v33  ;;  %v1284_v43 = vcombine.high %v256_v38, %v260_v58  ;;  %v1286_v44 = vcombine.high %v257_v39, %v261_v40 }
  0x5a   : > { %1021 = vmatpush1.bf16.msra.mxu0 %v1219_v48  ;;  %1064 = vmatpush1.bf16.msra.mxu1 %v1221_v49  ;;  %v269_v48 = vld [vmem:[%s1788_s1 + $0x378] sm:$0xff]  ;;  %v1283_v49 = vcombine.low %v256_v38, %v260_v58 }
  0x5b   : > { %1022 = vmatprep.subr.bf16.mxu0 %v1228_v50  ;;  %1065 = vmatprep.subr.bf16.mxu1 %v1230_v51  ;;  %v1285_v50 = vcombine.low %v257_v39, %v261_v40  ;;  %v1292_v51 = vcombine.high %v264_v45, %v268_v46  ;;  %v1294_v52 = vcombine.high %v265_v47, %v269_v48 }
  0x5e   : > { %1023 = vmatpush1.bf16.msra.mxu0 %v1227_v56  ;;  %1066 = vmatpush1.bf16.msra.mxu1 %v1229_v57  ;;  %v277_v56 = vld [vmem:[%s1788_s1 + $0x3b8] sm:$0xff]  ;;  %v1291_v57 = vcombine.low %v264_v45, %v268_v46 }
  0x5f   : > { %1024 = vmatprep.subr.bf16.mxu0 %v1236_v59  ;;  %1067 = vmatprep.subr.bf16.mxu1 %v1238_v60  ;;  %v1293_v59 = vcombine.low %v265_v47, %v269_v48  ;;  %v1300_v60 = vcombine.high %v272_v53, %v276_v54  ;;  %v1302_v61 = vcombine.high %v273_v55, %v277_v56 }
  0x62   : > { %1025 = vmatpush1.bf16.msra.mxu0 %v1235_v1  ;;  %1068 = vmatpush1.bf16.msra.mxu1 %v1237_v2  ;;  %v285_v1 = vld [vmem:[%s1788_s1 + $0x3f8] sm:$0xff]  ;;  %v1299_v2 = vcombine.low %v272_v53, %v276_v54 }
  0x63   : > { %1026 = vmatprep.subr.bf16.mxu0 %v1244_v3  ;;  %1069 = vmatprep.subr.bf16.mxu1 %v1246_v4  ;;  %v1301_v3 = vcombine.low %v273_v55, %v277_v56  ;;  %v1308_v4 = vcombine.high %v280_v62, %v284_v63  ;;  %v1310_v5 = vcombine.high %v281_v0, %v285_v1 }
  0x64   : > { %v1309_v7 = vcombine.low %v281_v0, %v285_v1 }
  0x66   : > { %1027 = vmatpush1.bf16.msra.mxu0 %v1243_v9  ;;  %1070 = vmatpush1.bf16.msra.mxu1 %v1245_v10 }
  0x67   : > { %1028 = vmatprep.subr.bf16.mxu0 %v1252_v11  ;;  %1071 = vmatprep.subr.bf16.mxu1 %v1254_v12 }
  0x6a   : > { %1029 = vmatpush1.bf16.msra.mxu0 %v1251_v18  ;;  %1072 = vmatpush1.bf16.msra.mxu1 %v1253_v19 }
  0x6b   : > { %1030 = vmatprep.subr.bf16.mxu0 %v1260_v20  ;;  %1073 = vmatprep.subr.bf16.mxu1 %v1262_v21 }
  0x6e   : > { %1031 = vmatpush1.bf16.msra.mxu0 %v1259_v26  ;;  %1074 = vmatpush1.bf16.msra.mxu1 %v1261_v27 }
  0x6f   : > { %1032 = vmatprep.subr.bf16.mxu0 %v1268_v28  ;;  %1075 = vmatprep.subr.bf16.mxu1 %v1270_v29 }
  0x72   : > { %1033 = vmatpush1.bf16.msra.mxu0 %v1267_v34  ;;  %1076 = vmatpush1.bf16.msra.mxu1 %v1269_v35 }
  0x73   : > { %1034 = vmatprep.subr.bf16.mxu0 %v1276_v36  ;;  %1077 = vmatprep.subr.bf16.mxu1 %v1278_v37 }
  0x76   : > { %1035 = vmatpush1.bf16.msra.mxu0 %v1275_v41  ;;  %1078 = vmatpush1.bf16.msra.mxu1 %v1277_v42 }
  0x77   : > { %1036 = vmatprep.subr.bf16.mxu0 %v1284_v43  ;;  %1079 = vmatprep.subr.bf16.mxu1 %v1286_v44 }
  0x7a   : > { %1037 = vmatpush1.bf16.msra.mxu0 %v1283_v49  ;;  %1080 = vmatpush1.bf16.msra.mxu1 %v1285_v50 }
  0x7b   : > { %1038 = vmatprep.subr.bf16.mxu0 %v1292_v51  ;;  %1081 = vmatprep.subr.bf16.mxu1 %v1294_v52 }
  0x7e   : > { %1039 = vmatpush1.bf16.msra.mxu0 %v1291_v57  ;;  %1082 = vmatpush1.bf16.msra.mxu1 %v1293_v59 }
  0x7f   : > { %1040 = vmatprep.subr.bf16.mxu0 %v1300_v60  ;;  %1083 = vmatprep.subr.bf16.mxu1 %v1302_v61 }
  0x82   : > { %1041 = vmatpush1.bf16.msra.mxu0 %v1299_v2  ;;  %1084 = vmatpush1.bf16.msra.mxu1 %v1301_v3 }
  0x83   : > { %1042 = vmatprep.subr.bf16.mxu0 %v1308_v4  ;;  %1085 = vmatprep.subr.bf16.mxu1 %v1310_v5 }
  0x86   : > { %1043 = vmatpush1.bf16.msra.mxu0 %v1307_v6  ;;  %1086 = vmatpush1.bf16.msra.mxu1 %v1309_v7 }
  0x89   : > { %1045 = vmatmul.mubr.bf16.vlgmr.msra.gmra.mrb[4].mxu0 %v1580_v14  ;;  %1088 = vmatmul.mubr.bf16.vlgmr.msra.gmra.mrb[4].mxu1 %v1580_v14 }
 0x11c   : > { %v960_v8 = vpop.f32.mrb[0].mxu0  ;;  %v1003_v9 = vpop.f32.mrb[0].mxu1 }
 0x11d   : > { %1098 = vst [vmem:[%s1766_s17] sm:$0xff] %v960_v8  ;;  %v962_v10 = vpop.f32.mrb[1].mxu0  ;;  %1100 = vst [vmem:[%s1766_s17 + $0x10] sm:$0xff] %v1003_v9  ;;  %v1005_v14 = vpop.f32.mrb[1].mxu1 }
 0x11e   : > { %1099 = vst [vmem:[%s1766_s17 + $0x8] sm:$0xff] %v962_v10  ;;  %v964_v11 = vpop.f32.mrb[2].mxu0  ;;  %1101 = vst [vmem:[%s1766_s17 + $0x18] sm:$0xff] %v1005_v14  ;;  %v1007_v12 = vpop.f32.mrb[2].mxu1 }
 0x11f   : > { %1106 = vst [vmem:[%s1766_s17 + $0x40] sm:$0xff] %v964_v11  ;;  %v966_v13 = vpop.f32.mrb[3].mxu0  ;;  %1108 = vst [vmem:[%s1766_s17 + $0x50] sm:$0xff] %v1007_v12  ;;  %v1009_v15 = vpop.f32.mrb[3].mxu1 }
 0x120   : > { %1107 = vst [vmem:[%s1766_s17 + $0x48] sm:$0xff] %v966_v13  ;;  %1109 = vst [vmem:[%s1766_s17 + $0x58] sm:$0xff] %v1009_v15 }
 0x15c   : > { %v1046_v16 = vpop.f32.mrb[4].mxu0  ;;  %v1089_v17 = vpop.f32.mrb[4].mxu1 }
 0x15d   : > { %1102 = vst [vmem:[%s1766_s17 + $0x20] sm:$0xff] %v1046_v16  ;;  %v1048_v18 = vpop.f32.mrb[5].mxu0  ;;  %1104 = vst [vmem:[%s1766_s17 + $0x30] sm:$0xff] %v1089_v17  ;;  %v1091_v19 = vpop.f32.mrb[5].mxu1 }
 0x15e   : > { %1103 = vst [vmem:[%s1766_s17 + $0x28] sm:$0xff] %v1048_v18  ;;  %v1050_v20 = vpop.f32.mrb[6].mxu0  ;;  %1105 = vst [vmem:[%s1766_s17 + $0x38] sm:$0xff] %v1091_v19  ;;  %v1093_v21 = vpop.f32.mrb[6].mxu1 }
 0x15f   : > { %1110 = vst [vmem:[%s1766_s17 + $0x60] sm:$0xff] %v1050_v20  ;;  %v1052_v22 = vpop.f32.mrb[7].mxu0  ;;  %1112 = vst [vmem:[%s1766_s17 + $0x70] sm:$0xff] %v1093_v21  ;;  %v1095_v23 = vpop.f32.mrb[7].mxu1 }
 0x160   : > { %1111 = vst [vmem:[%s1766_s17 + $0x68] sm:$0xff] %v1052_v22  ;;  %1113 = vst [vmem:[%s1766_s17 + $0x78] sm:$0xff] %v1095_v23 }
 0x161 PF: > { %s12_s9 = sadd.s32 1, %s1329_s9  }
 0x162   : > { %p9_p4 = scmp.ge.s32.totalorder %s12_s9, 6  }
 0x164   :  { %11 = sbr.rel (!%p9_p4) target bundleno = 1 (0x1), region = 58 }

</bundles_post_ra>
